<compile_context>
chip_gen: v5e
topology: v5e:2x2
jax: 0.10.0
libtpu: 0.0.40
codegen_flags: <defaults>
</compile_context>

<pallas_src>
import jax
import jax.numpy as jnp
from jax import lax
from jax.experimental import pallas as pl
from jax.experimental.pallas import tpu as pltpu

LANES = 128
_TM_MAX = 4096  # 2 MiB f32 block; 2 inputs x 2 buffers x 2 MiB = 8 MiB pipeline


# --------------------------------------------------------------------------
# Kernel
# --------------------------------------------------------------------------
def _make_nse_kernel(tm, n_valid, n_padded):
    """Build the fused single-pass kernel for a (rows, 128) slab.

    Accumulates (over valid elements only):
      num = sum((pred - obs)^2)
      s1  = sum(obs - shift)
      s2  = sum((obs - shift)^2)
    with `shift` = mean of the first obs tile (numerical conditioning only).
    """
    masked = (n_valid != n_padded)

    def kernel(pred_ref, obs_ref, num_out, s1_out, s2_out, shift_out,
               num_acc, s1_acc, s2_acc, shift_sm):
        i = pl.program_id(0)

        @pl.when(i == 0)
        def _init():
            num_acc[...] = jnp.zeros_like(num_acc)
            s1_acc[...] = jnp.zeros_like(s1_acc)
            s2_acc[...] = jnp.zeros_like(s2_acc)
            o0 = obs_ref[...].astype(jnp.float32)
            if masked:
                # Mean over valid elements of tile 0 only (padding is zeros).
                row = lax.broadcasted_iota(jnp.int32, (tm, LANES), 0)
                lane = lax.broadcasted_iota(jnp.int32, (tm, LANES), 1)
                valid0 = (row * LANES + lane) < n_valid
                cnt = min(n_valid, tm * LANES)  # static python int
                shift_sm[0] = jnp.sum(
                    jnp.where(valid0, o0, jnp.float32(0.0))) / jnp.float32(cnt)
            else:
                shift_sm[0] = jnp.mean(o0)

        p = pred_ref[...].astype(jnp.float32)
        o = obs_ref[...].astype(jnp.float32)
        shift = shift_sm[0]

        d = p - o
        dsq = d * d
        osh = o - shift
        osq = osh * osh

        if masked:
            # Zero out contributions of the padded tail (static code: only
            # generated when padding exists; cheap VPU selects otherwise hidden
            # under the HBM-bound DMA).
            row = lax.broadcasted_iota(jnp.int32, (tm, LANES), 0)
            lane = lax.broadcasted_iota(jnp.int32, (tm, LANES), 1)
            idx = (i * tm + row) * LANES + lane
            valid = idx < n_valid
            zero = jnp.float32(0.0)
            dsq = jnp.where(valid, dsq, zero)
            osh = jnp.where(valid, osh, zero)
            osq = jnp.where(valid, osq, zero)

        # Per-step reduce each tile to a single vreg: reshape splits the
        # sublane dim at an (8,128) boundary, sum(axis=0) is pure vreg adds.
        num_acc[...] += jnp.sum(dsq.reshape(tm // 8, 8, LANES), axis=0)
        s1_acc[...] += jnp.sum(osh.reshape(tm // 8, 8, LANES), axis=0)
        s2_acc[...] += jnp.sum(osq.reshape(tm // 8, 8, LANES), axis=0)

        @pl.when(i == pl.num_programs(0) - 1)
        def _finalize():
            # Single cross-lane/sublane reduce per output, paid once.
            num_out[0, 0] = jnp.sum(num_acc[...])
            s1_out[0, 0] = jnp.sum(s1_acc[...])
            s2_out[0, 0] = jnp.sum(s2_acc[...])
            shift_out[0, 0] = shift_sm[0]

    return kernel


# --------------------------------------------------------------------------
# Wrapper
# --------------------------------------------------------------------------
def _choose_tm(rows):
    """Largest row tile (multiple of 8, <= _TM_MAX) with <= ~12.5% pad waste."""
    if rows <= _TM_MAX:
        return max(8, ((rows + 7) // 8) * 8)
    for cand in (_TM_MAX, 2048, 1024, 512):
        if ((-rows) % cand) * 8 <= rows:
            return cand
    return 512


def _nse_sums(pred, obs):
    """One fused HBM sweep over pred+obs; returns (num, s1, s2, shift) scalars."""
    n = pred.size
    rows_min = -(-n // LANES)                  # ceil(n / 128)
    tm = _choose_tm(rows_min)
    rows = -(-rows_min // tm) * tm             # pad rows to a whole tile count
    steps = rows // tm
    n_padded = rows * LANES

    def to_slab(x):
        flat = x.reshape(-1)
        if n_padded != n:
            flat = jnp.pad(flat, (0, n_padded - n))  # zeros; masked in-kernel
        return flat.reshape(rows, LANES)

    pred2d = to_slab(pred)
    obs2d = to_slab(obs)

    kernel = _make_nse_kernel(tm, n, n_padded)
    scalar = jax.ShapeDtypeStruct((1, 1), jnp.float32)
    in_map = lambda i: (i, 0)
    out_map = lambda i: (0, 0)

    num, s1, s2, shift = pl.pallas_call(
        kernel,
        out_shape=(scalar, scalar, scalar, scalar),
        grid_spec=pltpu.PrefetchScalarGridSpec(
            num_scalar_prefetch=0,
            grid=(steps,),
            in_specs=[
                pl.BlockSpec((tm, LANES), in_map),
                pl.BlockSpec((tm, LANES), in_map),
            ],
            out_specs=[
                pl.BlockSpec((1, 1), out_map, memory_space=pltpu.SMEM)
                for _ in range(4)
            ],
            scratch_shapes=[
                pltpu.VMEM((8, LANES), jnp.float32),   # num accumulator
                pltpu.VMEM((8, LANES), jnp.float32),   # s1 accumulator
                pltpu.VMEM((8, LANES), jnp.float32),   # s2 accumulator
                pltpu.SMEM((1,), jnp.float32),         # shift scalar
            ],
        ),
        compiler_params=pltpu.CompilerParams(
            dimension_semantics=("arbitrary",),
            vmem_limit_bytes=32 * 1024 * 1024,
        ),
    )(pred2d, obs2d)
    return num[0, 0], s1[0, 0], s2[0, 0], shift[0, 0]


@jax.jit
def nse_loss(pred, obs):
    """Nash–Sutcliffe efficiency loss: 1 - sum((p-o)^2) / sum((o-mean(o))^2).

    Any input shape/size is accepted.  bf16 inputs (fp8 on v7x) are encouraged
    for this HBM-bound reduction; accumulation is f32 on-chip regardless.
    denominator == 0 (constant obs) yields inf/nan, matching torch.
    """
    assert pred.shape == obs.shape, "pred/obs must have matching shapes"
    n = jnp.float32(pred.size)
    numerator, s1, s2, _shift = _nse_sums(pred, obs)
    # Shifted-variance identity: sum((o - mean)^2) = s2 - s1^2 / N, with
    # s1/s2 accumulated about a shift close to mean(obs) -> no cancellation.
    denominator = s2 - (s1 * s1) / n
    return jnp.float32(1.0) - numerator / denominator


# --------------------------------------------------------------------------
# Demo / self-check
# --------------------------------------------------------------------------
if __name__ == "__main__":
    key = jax.random.PRNGKey(0)
    k1, k2, k3, k4 = jax.random.split(key, 4)

    def ref_nse(pred, obs):  # plain-JAX reference, same math as the torch module
        p = pred.astype(jnp.float32)
        o = obs.astype(jnp.float32)
        num = jnp.sum((p - o) ** 2)
        den = jnp.sum((o - jnp.mean(o)) ** 2)
        return 1.0 - num / den

    # Case 1: NCHW-style input, exact multiple of (8,128) -> unmasked fast path.
    shape1 = (2, 4, 16, 16)
    pred1 = jax.random.normal(k1, shape1, dtype=jnp.float32)
    obs1 = jax.random.normal(k2, shape1, dtype=jnp.float32) + 0.5
    out1 = jax.block_until_ready(nse_loss(pred1, obs1))
    assert jnp.allclose(out1, ref_nse(pred1, obs1), rtol=1e-5, atol=1e-5), (
        out1, ref_nse(pred1, obs1))

    # Case 2: awkward size (105 elems, large mean) -> pad + in-kernel tail mask,
    # and exercises the shift that guards the one-pass variance formula.
    shape2 = (3, 5, 7)
    pred2 = jax.random.normal(k3, shape2, dtype=jnp.float32) * 2.0 + 10.0
    obs2 = jax.random.normal(k4, shape2, dtype=jnp.float32) + 10.0
    out2 = jax.block_until_ready(nse_loss(pred2, obs2))
    assert jnp.allclose(out2, ref_nse(pred2, obs2), rtol=1e-4, atol=1e-4), (
        out2, ref_nse(pred2, obs2))

    # .item() in torch returns a python float; mirror that on the host side.
    result = float(out1)
    print("KERNEL_OK")
</pallas_src>

<mosaic_0001>
module attributes {stable_mosaic.version = 11 : i64} {
  func.func @kernel(%arg0: i32, %arg1: memref<16x128xf32, #tpu.memory_space<vmem>>, %arg2: memref<16x128xf32, #tpu.memory_space<vmem>>, %arg3: memref<1x1xf32, #tpu.memory_space<smem>>, %arg4: memref<1x1xf32, #tpu.memory_space<smem>>, %arg5: memref<1x1xf32, #tpu.memory_space<smem>>, %arg6: memref<1x1xf32, #tpu.memory_space<smem>>, %arg7: memref<8x128xf32, #tpu.memory_space<vmem>>, %arg8: memref<8x128xf32, #tpu.memory_space<vmem>>, %arg9: memref<8x128xf32, #tpu.memory_space<vmem>>, %arg10: memref<1xf32, #tpu.memory_space<smem>>) attributes {dimension_semantics = [#tpu.dimension_semantics<arbitrary>], iteration_bounds = array<i64: 1>, scalar_prefetch = 0 : i64, scratch_operands = 4 : i64, tpu.core_type = #tpu.core_type<tc>, window_params = [{transform_indices = @transform_0, window_bounds = array<i64: 16, 128>}, {transform_indices = @transform_1, window_bounds = array<i64: 16, 128>}, {transform_indices = @transform_2, window_bounds = array<i64: 1, 1>}, {transform_indices = @transform_3, window_bounds = array<i64: 1, 1>}, {transform_indices = @transform_4, window_bounds = array<i64: 1, 1>}, {transform_indices = @transform_5, window_bounds = array<i64: 1, 1>}]} {
    %c0_i32 = arith.constant 0 : i32
    %0 = arith.cmpi eq, %arg0, %c0_i32 : i32
    %1 = arith.extui %0 : i1 to i32
    %c0_i32_0 = arith.constant 0 : i32
    %2 = arith.cmpi ne, %1, %c0_i32_0 : i32
    scf.if %2 {
      %cst_21 = arith.constant 0.000000e+00 : f32
      %29 = vector.broadcast %cst_21 : f32 to vector<8x128xf32>
      %c0_22 = arith.constant 0 : index
      %c0_23 = arith.constant 0 : index
      %30 = vector.load %arg7[%c0_22, %c0_23] : memref<8x128xf32, #tpu.memory_space<vmem>>, vector<8x128xf32>
      tpu.vector_store %arg7[%c0_22, %c0_23], %29 {strides = array<i32>} : memref<8x128xf32, #tpu.memory_space<vmem>>, vector<8x128xf32>,
      %cst_24 = arith.constant 0.000000e+00 : f32
      %31 = vector.broadcast %cst_24 : f32 to vector<8x128xf32>
      %c0_25 = arith.constant 0 : index
      %c0_26 = arith.constant 0 : index
      %32 = vector.load %arg8[%c0_25, %c0_26] : memref<8x128xf32, #tpu.memory_space<vmem>>, vector<8x128xf32>
      tpu.vector_store %arg8[%c0_25, %c0_26], %31 {strides = array<i32>} : memref<8x128xf32, #tpu.memory_space<vmem>>, vector<8x128xf32>,
      %cst_27 = arith.constant 0.000000e+00 : f32
      %33 = vector.broadcast %cst_27 : f32 to vector<8x128xf32>
      %c0_28 = arith.constant 0 : index
      %c0_29 = arith.constant 0 : index
      %34 = vector.load %arg9[%c0_28, %c0_29] : memref<8x128xf32, #tpu.memory_space<vmem>>, vector<8x128xf32>
      tpu.vector_store %arg9[%c0_28, %c0_29], %33 {strides = array<i32>} : memref<8x128xf32, #tpu.memory_space<vmem>>, vector<8x128xf32>,
      %c0_30 = arith.constant 0 : index
      %c0_31 = arith.constant 0 : index
      %35 = vector.load %arg2[%c0_30, %c0_31] : memref<16x128xf32, #tpu.memory_space<vmem>>, vector<16x128xf32>
      %36 = vector.shape_cast %35 : vector<16x128xf32> to vector<1x16x128xf32>
      %cst_32 = arith.constant dense<0.000000e+00> : vector<1xf32>
      %37 = vector.multi_reduction <add>, %36, %cst_32 [1, 2] : vector<1x16x128xf32> to vector<1xf32>
      %38 = vector.shape_cast %37 : vector<1xf32> to vector<1x1x1xf32>
      %39 = vector.extract %38[0, 0, 0] : f32 from vector<1x1x1xf32>
      %cst_33 = arith.constant 2.048000e+03 : f32
      %40 = arith.divf %39, %cst_33 : f32
      %c0_34 = arith.constant 0 : index
      %41 = memref.load %arg10[%c0_34] : memref<1xf32, #tpu.memory_space<smem>>
      memref.store %40, %arg10[%c0_34] : memref<1xf32, #tpu.memory_space<smem>>
    } else {
    }
    %c0 = arith.constant 0 : index
    %c0_1 = arith.constant 0 : index
    %3 = vector.load %arg1[%c0, %c0_1] : memref<16x128xf32, #tpu.memory_space<vmem>>, vector<16x128xf32>
    %c0_2 = arith.constant 0 : index
    %c0_3 = arith.constant 0 : index
    %4 = vector.load %arg2[%c0_2, %c0_3] : memref<16x128xf32, #tpu.memory_space<vmem>>, vector<16x128xf32>
    %c0_4 = arith.constant 0 : index
    %5 = memref.load %arg10[%c0_4] : memref<1xf32, #tpu.memory_space<smem>>
    %6 = arith.subf %3, %4 : vector<16x128xf32>
    %7 = arith.mulf %6, %6 : vector<16x128xf32>
    %8 = vector.broadcast %5 : f32 to vector<16x128xf32>
    %9 = arith.subf %4, %8 : vector<16x128xf32>
    %10 = arith.mulf %9, %9 : vector<16x128xf32>
    %c0_5 = arith.constant 0 : index
    %c0_6 = arith.constant 0 : index
    %11 = vector.load %arg7[%c0_5, %c0_6] : memref<8x128xf32, #tpu.memory_space<vmem>>, vector<8x128xf32>
    %12 = vector.shape_cast %7 : vector<16x128xf32> to vector<2x8x128xf32>
    %cst = arith.constant dense<0.000000e+00> : vector<8x128xf32>
    %13 = vector.multi_reduction <add>, %12, %cst [0] : vector<2x8x128xf32> to vector<8x128xf32>
    %14 = arith.addf %11, %13 : vector<8x128xf32>
    %c0_7 = arith.constant 0 : index
    %c0_8 = arith.constant 0 : index
    %15 = vector.load %arg7[%c0_7, %c0_8] : memref<8x128xf32, #tpu.memory_space<vmem>>, vector<8x128xf32>
    tpu.vector_store %arg7[%c0_7, %c0_8], %14 {strides = array<i32>} : memref<8x128xf32, #tpu.memory_space<vmem>>, vector<8x128xf32>,
    %c0_9 = arith.constant 0 : index
    %c0_10 = arith.constant 0 : index
    %16 = vector.load %arg8[%c0_9, %c0_10] : memref<8x128xf32, #tpu.memory_space<vmem>>, vector<8x128xf32>
    %17 = vector.shape_cast %9 : vector<16x128xf32> to vector<2x8x128xf32>
    %cst_11 = arith.constant dense<0.000000e+00> : vector<8x128xf32>
    %18 = vector.multi_reduction <add>, %17, %cst_11 [0] : vector<2x8x128xf32> to vector<8x128xf32>
    %19 = arith.addf %16, %18 : vector<8x128xf32>
    %c0_12 = arith.constant 0 : index
    %c0_13 = arith.constant 0 : index
    %20 = vector.load %arg8[%c0_12, %c0_13] : memref<8x128xf32, #tpu.memory_space<vmem>>, vector<8x128xf32>
    tpu.vector_store %arg8[%c0_12, %c0_13], %19 {strides = array<i32>} : memref<8x128xf32, #tpu.memory_space<vmem>>, vector<8x128xf32>,
    %c0_14 = arith.constant 0 : index
    %c0_15 = arith.constant 0 : index
    %21 = vector.load %arg9[%c0_14, %c0_15] : memref<8x128xf32, #tpu.memory_space<vmem>>, vector<8x128xf32>
    %22 = vector.shape_cast %10 : vector<16x128xf32> to vector<2x8x128xf32>
    %cst_16 = arith.constant dense<0.000000e+00> : vector<8x128xf32>
    %23 = vector.multi_reduction <add>, %22, %cst_16 [0] : vector<2x8x128xf32> to vector<8x128xf32>
    %24 = arith.addf %21, %23 : vector<8x128xf32>
    %c0_17 = arith.constant 0 : index
    %c0_18 = arith.constant 0 : index
    %25 = vector.load %arg9[%c0_17, %c0_18] : memref<8x128xf32, #tpu.memory_space<vmem>>, vector<8x128xf32>
    tpu.vector_store %arg9[%c0_17, %c0_18], %24 {strides = array<i32>} : memref<8x128xf32, #tpu.memory_space<vmem>>, vector<8x128xf32>,
    %c0_i32_19 = arith.constant 0 : i32
    %26 = arith.cmpi eq, %arg0, %c0_i32_19 : i32
    %27 = arith.extui %26 : i1 to i32
    %c0_i32_20 = arith.constant 0 : i32
    %28 = arith.cmpi ne, %27, %c0_i32_20 : i32
    scf.if %28 {
      %c0_21 = arith.constant 0 : index
      %c0_22 = arith.constant 0 : index
      %29 = vector.load %arg7[%c0_21, %c0_22] : memref<8x128xf32, #tpu.memory_space<vmem>>, vector<8x128xf32>
      %30 = vector.shape_cast %29 : vector<8x128xf32> to vector<1x8x128xf32>
      %cst_23 = arith.constant dense<0.000000e+00> : vector<1xf32>
      %31 = vector.multi_reduction <add>, %30, %cst_23 [1, 2] : vector<1x8x128xf32> to vector<1xf32>
      %32 = vector.shape_cast %31 : vector<1xf32> to vector<1x1x1xf32>
      %33 = vector.extract %32[0, 0, 0] : f32 from vector<1x1x1xf32>
      %c0_24 = arith.constant 0 : index
      %c0_25 = arith.constant 0 : index
      %34 = memref.load %arg3[%c0_24, %c0_25] : memref<1x1xf32, #tpu.memory_space<smem>>
      memref.store %33, %arg3[%c0_24, %c0_25] : memref<1x1xf32, #tpu.memory_space<smem>>
      %c0_26 = arith.constant 0 : index
      %c0_27 = arith.constant 0 : index
      %35 = vector.load %arg8[%c0_26, %c0_27] : memref<8x128xf32, #tpu.memory_space<vmem>>, vector<8x128xf32>
      %36 = vector.shape_cast %35 : vector<8x128xf32> to vector<1x8x128xf32>
      %cst_28 = arith.constant dense<0.000000e+00> : vector<1xf32>
      %37 = vector.multi_reduction <add>, %36, %cst_28 [1, 2] : vector<1x8x128xf32> to vector<1xf32>
      %38 = vector.shape_cast %37 : vector<1xf32> to vector<1x1x1xf32>
      %39 = vector.extract %38[0, 0, 0] : f32 from vector<1x1x1xf32>
      %c0_29 = arith.constant 0 : index
      %c0_30 = arith.constant 0 : index
      %40 = memref.load %arg4[%c0_29, %c0_30] : memref<1x1xf32, #tpu.memory_space<smem>>
      memref.store %39, %arg4[%c0_29, %c0_30] : memref<1x1xf32, #tpu.memory_space<smem>>
      %c0_31 = arith.constant 0 : index
      %c0_32 = arith.constant 0 : index
      %41 = vector.load %arg9[%c0_31, %c0_32] : memref<8x128xf32, #tpu.memory_space<vmem>>, vector<8x128xf32>
      %42 = vector.shape_cast %41 : vector<8x128xf32> to vector<1x8x128xf32>
      %cst_33 = arith.constant dense<0.000000e+00> : vector<1xf32>
      %43 = vector.multi_reduction <add>, %42, %cst_33 [1, 2] : vector<1x8x128xf32> to vector<1xf32>
      %44 = vector.shape_cast %43 : vector<1xf32> to vector<1x1x1xf32>
      %45 = vector.extract %44[0, 0, 0] : f32 from vector<1x1x1xf32>
      %c0_34 = arith.constant 0 : index
      %c0_35 = arith.constant 0 : index
      %46 = memref.load %arg5[%c0_34, %c0_35] : memref<1x1xf32, #tpu.memory_space<smem>>
      memref.store %45, %arg5[%c0_34, %c0_35] : memref<1x1xf32, #tpu.memory_space<smem>>
      %c0_36 = arith.constant 0 : index
      %47 = memref.load %arg10[%c0_36] : memref<1xf32, #tpu.memory_space<smem>>
      %c0_37 = arith.constant 0 : index
      %c0_38 = arith.constant 0 : index
      %48 = memref.load %arg6[%c0_37, %c0_38] : memref<1x1xf32, #tpu.memory_space<smem>>
      memref.store %47, %arg6[%c0_37, %c0_38] : memref<1x1xf32, #tpu.memory_space<smem>>
    } else {
    }
    return
  }
  func.func @transform_0(%arg0: i32) -> (i32, i32) {
    %c0_i32 = arith.constant 0 : i32
    %c0_i32_0 = arith.constant 0 : i32
    return %arg0, %c0_i32 : i32, i32
  }
  func.func @transform_1(%arg0: i32) -> (i32, i32) {
    %c0_i32 = arith.constant 0 : i32
    %c0_i32_0 = arith.constant 0 : i32
    return %arg0, %c0_i32 : i32, i32
  }
  func.func @transform_2(%arg0: i32) -> (i32, i32) {
    %c0_i32 = arith.constant 0 : i32
    %c0_i32_0 = arith.constant 0 : i32
    %c0_i32_1 = arith.constant 0 : i32
    return %c0_i32, %c0_i32_0 : i32, i32
  }
  func.func @transform_3(%arg0: i32) -> (i32, i32) {
    %c0_i32 = arith.constant 0 : i32
    %c0_i32_0 = arith.constant 0 : i32
    %c0_i32_1 = arith.constant 0 : i32
    return %c0_i32, %c0_i32_0 : i32, i32
  }
  func.func @transform_4(%arg0: i32) -> (i32, i32) {
    %c0_i32 = arith.constant 0 : i32
    %c0_i32_0 = arith.constant 0 : i32
    %c0_i32_1 = arith.constant 0 : i32
    return %c0_i32, %c0_i32_0 : i32, i32
  }
  func.func @transform_5(%arg0: i32) -> (i32, i32) {
    %c0_i32 = arith.constant 0 : i32
    %c0_i32_0 = arith.constant 0 : i32
    %c0_i32_1 = arith.constant 0 : i32
    return %c0_i32, %c0_i32_0 : i32, i32
  }
}

</mosaic_0001>

<bundles_post_ra>
// kernel: nse_loss.1
= control target key start
LH: loop header
LB: loop body
LE: loop exit
PB: predicated region body
PF: predicated region fallthrough
CT: control target
= control target key end

     0   :  { %11 = vsyncpa [#allocation7], 0  ;;  %s302_s0 = inlined_call_operand.vmem [shape: f32[16,128], index: 0, kind: input, shape index: {}]   ;;  %s303_s1 = inlined_call_operand.vmem [shape: f32[16,128], index: 1, kind: input, shape index: {}]   ;;  %s304_s2 = inlined_call_operand.hbm [shape: f32[1,1], index: 2, kind: output, shape index: {0}]   ;;  %s305_s3 = inlined_call_operand.hbm [shape: f32[1,1], index: 3, kind: output, shape index: {1}]   ;;  %s306_s4 = inlined_call_operand.hbm [shape: f32[1,1], index: 4, kind: output, shape index: {2}]   ;;  %s307_s5 = inlined_call_operand.hbm [shape: f32[1,1], index: 5, kind: output, shape index: {3}]  }
   0x1   :  { %12 = vsyncpa [#allocation9], 0  ;;  %v25_v0 = vld [vmem:[%s303_s1] sm:$0xff]  ;;  %v26_v1 = vld [vmem:[%s303_s1 + $0x8] sm:$0xff] }
   0x2   :  { %13 = vsyncpa [#allocation12], 0  ;;  %v27_v2 = vadd.f32 %v26_v1, %v25_v0  ;;  %v243_v3 = vmov 2048.0   ;;  %v48_v17 = vld [vmem:[%s302_s0] sm:$0xff]  ;;  %v49_v18 = vld [vmem:[%s302_s0 + $0x8] sm:$0xff]  ;;  %s148_s29 = sshll.u32 %s307_s5, 4  ;;  %s149_s29 = int_to_ptr.hbm [resolvable:$true] %s148_s29 }
   0x3   :  { %187 = vrcp.f32 %v243_v3  ;;  %v53_v19 = vsub.f32 %v48_v17, %v25_v0  ;;  %v54_v20 = vsub.f32 %v49_v18, %v26_v1  ;;  %s244_s30 = smov [#allocation11]   ;;  %s121_s7 = sshll.u32 %s304_s2, 4  ;;  %s122_s7 = int_to_ptr.hbm [resolvable:$true] %s121_s7 }
   0x4   :  { %28 = vadd.xlane.f32.xlu0 %v27_v2  ;;  %s245_s9 = smov [#allocation6]   ;;  %s130_s12 = sshll.u32 %s305_s3, 4  ;;  %s131_s12 = int_to_ptr.hbm [resolvable:$true] %s130_s12 }
   0x5   :  { %v55_v21 = vmul.f32 %v53_v19, %v53_v19  ;;  %v56_v22 = vmul.f32 %v54_v20, %v54_v20  ;;  %s246_s14 = smov [#allocation8]   ;;  %s139_s17 = sshll.u32 %s306_s4, 4  ;;  %s140_s17 = int_to_ptr.hbm [resolvable:$true] %s139_s17 }
   0x6   :  { %s247_s18 = smov [#allocation10]  }
   0x7   :  { %v63_v23 = vadd.f32 %v56_v22, %v55_v21 }
   0x9   :  { %v188_v4 = vpop.eup %187 }
   0xa   :  { %v38_v5 = vmul.f32 2048.0, %v188_v4  ;;  %vm42_vm0 = vweird.f32 %v188_v4 }
   0xc   :  { %v39_v6 = vsub.f32 1.0, %v38_v5  ;;  %78 = vadd.xlane.f32.xlu0 %v63_v23 }
   0xe   :  { %v40_v10 = vmul.f32 %v188_v4, %v39_v6 }
  0x10   :  { %v41_v13 = vadd.f32 %v188_v4, %v40_v10 }
  0x12   :  { %v43_v16 = vsel %vm42_vm0, %v188_v4, %v41_v13 }
  0x77   :  { %v29_v7 = vpop.xlane.xlu0 %28 }
  0x78   :  { %v30_v8 = vrot.slane %v29_v7, 4 }
  0x7a   :  { %v31_v9 = vadd.f32 %v30_v8, %v29_v7 }
  0x7c   :  { %v32_v11 = vrot.slane %v31_v9, 2 }
  0x7e   :  { %v33_v12 = vadd.f32 %v32_v11, %v31_v9 }
  0x7f   :  { %v79_v31 = vpop.xlane.xlu0 %78 }
  0x80   :  { %v34_v14 = vrot.slane %v33_v12, 1  ;;  %v80_v32 = vrot.slane %v79_v31, 4 }
  0x82   :  { %v35_v15 = vadd.f32 %v34_v14, %v33_v12  ;;  %v81_v33 = vadd.f32 %v80_v32, %v79_v31 }
  0x84   :  { %172 = vpush %v35_v15  ;;  %v82_v34 = vrot.slane %v81_v33, 2 }
  0x85   :  { %174 = vpush %v43_v16 }
  0x86   :  { %v83_v35 = vadd.f32 %v82_v34, %v81_v33 }
  0x88   :  { %v84_v36 = vrot.slane %v83_v35, 1 }
  0x8a   :  { %v85_v37 = vadd.f32 %v84_v36, %v83_v35 }
  0x8c   :  { %176 = vpush %v85_v37 }
  0xb5   :  { %s173_s25 = spop %172 }
  0xb6   :  { %s175_s26 = spop %174 }
  0xb7   :  { %s45_s27 = smul.f32 %s175_s26, %s173_s25 }
  0xb9   :  { %v57_v24 = vstv %s45_s27  ;;  %115 = sst [smem:[#allocation11]] %s45_s27 }
  0xba   :  { %v58_v25 = vsub.f32 %v25_v0, %v57_v24  ;;  %v59_v26 = vsub.f32 %v26_v1, %v57_v24  ;;  %151 = dma.smem_to_hbm %s244_s30, 16, %s149_s29, [#allocation12]  }
  0xbc   :  { %v67_v27 = vadd.f32 %v59_v26, %v58_v25  ;;  %v60_v28 = vmul.f32 %v58_v25, %v58_v25  ;;  %v61_v29 = vmul.f32 %v59_v26, %v59_v26 }
  0xbd   :  { %s177_s8 = spop %176 }
  0xbe   :  { %90 = vadd.xlane.f32.xlu1 %v67_v27  ;;  %v71_v30 = vadd.f32 %v61_v29, %v60_v28  ;;  %88 = sst [smem:[#allocation6]] %s177_s8 }
  0xbf   :  { %124 = dma.smem_to_hbm %s245_s9, 16, %s122_s7, [#allocation7]  }
  0xc6   :  { %102 = vadd.xlane.f32.xlu1 %v71_v30 }
 0x131   :  { %v91_v38 = vpop.xlane.xlu1 %90 }
 0x132   :  { %v92_v39 = vrot.slane %v91_v38, 4 }
 0x134   :  { %v93_v40 = vadd.f32 %v92_v39, %v91_v38 }
 0x136   :  { %v94_v41 = vrot.slane %v93_v40, 2 }
 0x138   :  { %v95_v42 = vadd.f32 %v94_v41, %v93_v40 }
 0x139   :  { %v103_v43 = vpop.xlane.xlu1 %102 }
 0x13a   :  { %v104_v44 = vrot.slane %v103_v43, 4  ;;  %v96_v45 = vrot.slane %v95_v42, 1 }
 0x13c   :  { %v105_v46 = vadd.f32 %v104_v44, %v103_v43  ;;  %v97_v47 = vadd.f32 %v96_v45, %v95_v42 }
 0x13e   :  { %v106_v48 = vrot.slane %v105_v46, 2  ;;  %178 = vpush %v97_v47 }
 0x140   :  { %v107_v49 = vadd.f32 %v106_v48, %v105_v46 }
 0x142   :  { %v108_v50 = vrot.slane %v107_v49, 1 }
 0x144   :  { %v109_v51 = vadd.f32 %v108_v50, %v107_v49 }
 0x146   :  { %180 = vpush %v109_v51 }
 0x16f   :  { %s179_s13 = spop %178 }
 0x170   :  { %100 = sst [smem:[#allocation8]] %s179_s13 }
 0x171   :  { %133 = dma.smem_to_hbm %s246_s14, 16, %s131_s12, [#allocation9]  }
 0x177   :  { %s181_s2 = spop %180 }
 0x178   :  { %112 = sst [smem:[#allocation10]] %s181_s2 }
 0x179   :  { %142 = dma.smem_to_hbm %s247_s18, 16, %s140_s17, [#allocation9]  }
 0x17a   :  { %237 = dma.done.wait [#allocation7], 16  }
 0x17b   :  { %238 = vsyncadd [#allocation7], 4294967280 }
 0x17c   :  { %239 = dma.done.wait [#allocation9], 32  }
 0x17d   :  { %240 = vsyncadd [#allocation9], 4294967264 }
 0x17e   :  { %241 = dma.done.wait [#allocation12], 16  }
 0x17f   :  { %242 = vsyncadd [#allocation12], 4294967280 }
 0x180   :  { %168 = sfence }
 0x181   :  { %169 = vsyncpa [#allocation7], 1 }
 0x182   :  { %170 = vsyncpa [#allocation9], 1 }
 0x183   :  { %171 = vsyncpa [#allocation12], 1 }

</bundles_post_ra>
